<compile_context>
chip_gen: v6e
topology: v6e:2x2x1
jax: 0.10.0
libtpu: 0.0.40
codegen_flags: <defaults>
</compile_context>

<pallas_src>
import jax
import jax.numpy as jnp
from jax.experimental import pallas as pl
from jax.experimental.pallas import tpu as pltpu


def _concat_fuser_kernel(z_ref, t_ref, wz_ref, wt_ref, b_ref, out_ref):
    # Two tiny MXU dots (f32 accumulate) replace concat+dot; the MXU has huge
    # slack here and this avoids materializing [B, C+T] in HBM.
    acc = jnp.dot(z_ref[...], wz_ref[...], preferred_element_type=jnp.float32)
    acc = acc + jnp.dot(t_ref[...], wt_ref[...],
                        preferred_element_type=jnp.float32)
    # +bias ([1, 2H] broadcasts over [TB, 2H]) -> tanh (EUP) -> one
    # lane-dense [TB, 2H] store.
    out_ref[...] = jnp.tanh(acc + b_ref[...]).astype(out_ref.dtype)


def _round_up(x, m):
    return ((x + m - 1) // m) * m


def _sublane_multiple(dtype):
    # Sub-32-bit dtypes pack along sublanes: min second-minor tile is
    # 8 (f32) / 16 (bf16) / 32 (int8 / fp8).
    return {4: 8, 2: 16, 1: 32}.get(jnp.dtype(dtype).itemsize, 8)


def concat_fuser(z, t, weight, bias, *, max_tile_rows=2048,
                 min_pallas_batch=256):
    """ConcatFuser forward.

    z: [B, C], t: [B, T], weight: [C+T, 2H] (transpose of torch's [2H, C+T]),
    bias: [2H].  Returns [h, c], each [1, B, H].
    """
    B, C = z.shape
    _, T = t.shape
    K = C + T
    H2 = weight.shape[1]
    assert weight.shape[0] == K and H2 % 2 == 0
    H = H2 // 2
    dtype = z.dtype

    if B < min_pallas_batch:
        # Small-batch fallback: at tiny B the fixed pallas_call / DMA-pipeline
        # setup dwarfs the work and XLA fuses this better than a 1-step kernel.
        hidden = jnp.tanh(jnp.concatenate([z, t], axis=1) @ weight + bias)[None]
        return [hidden[..., :H], hidden[..., H:]]

    # Split the weight along the contraction dim once (tiny: K*2H elements);
    # this lets the kernel consume z and t directly (no [B, K] concat pass).
    wz = weight[:C, :]
    wt = weight[C:, :]
    b2 = bias.reshape(1, H2)

    itemsize = jnp.dtype(dtype).itemsize
    sub = _sublane_multiple(dtype)

    # --- batch tile selection (dtype-aware sublane multiple, VMEM budget) ---
    TB = _round_up(min(max_tile_rows, _round_up(B, sub)), sub)

    def _footprint(tb):
        streamed = tb * (C + T + H2) * itemsize          # z + t in, fused out
        resident = (K * H2 + H2) * itemsize              # weights + bias
        return 2 * streamed + 2 * resident               # conservative: 2x bufs

    budget = 8 * 1024 * 1024
    while TB > sub and _footprint(TB) > budget:
        TB = _round_up(TB // 2, sub)

    # Keep >= 2 grid steps so v7x's two TensorCores both get work
    # (dimension_semantics=("parallel",) shards the batch axis).
    if _round_up(B, sub) >= 2 * sub:
        TB = min(TB, _round_up((B + 1) // 2, sub))

    B_pad = _round_up(B, TB)
    if B_pad != B:
        # Zero rows produce tanh(bias) and are sliced off below.
        z = jnp.pad(z, ((0, B_pad - B), (0, 0)))
        t = jnp.pad(t, ((0, B_pad - B), (0, 0)))

    vmem_bytes = int(min(64 * 1024 * 1024,
                         max(4 * 1024 * 1024, 2 * _footprint(TB))))

    out_pad = pl.pallas_call(
        _concat_fuser_kernel,
        out_shape=jax.ShapeDtypeStruct((B_pad, H2), dtype),
        grid=(B_pad // TB,),
        in_specs=[
            pl.BlockSpec((TB, C), lambda i: (i, 0)),      # z tile  (streamed)
            pl.BlockSpec((TB, T), lambda i: (i, 0)),      # t tile  (streamed)
            pl.BlockSpec((C, H2), lambda i: (0, 0)),      # W[:C]   (resident)
            pl.BlockSpec((T, H2), lambda i: (0, 0)),      # W[C:]   (resident)
            pl.BlockSpec((1, H2), lambda i: (0, 0)),      # bias    (resident)
        ],
        out_specs=pl.BlockSpec((TB, H2), lambda i: (i, 0)),  # lane-dense store
        compiler_params=pltpu.CompilerParams(
            dimension_semantics=("parallel",),            # megacore on v7x
            vmem_limit_bytes=vmem_bytes,
        ),
    )(z, t, wz, wt, b2)

    hidden = out_pad[:B][None]                            # [1, B, 2H]
    return [hidden[..., :H], hidden[..., H:]]             # chunk(dim=2)


if __name__ == "__main__":
    # Small shapes consistent with the module.
    B, code_size, num_topics, hidden_size = 8, 16, 16, 32

    key = jax.random.PRNGKey(0)
    kz, kt, kw, kb = jax.random.split(key, 4)

    z = jax.random.normal(kz, (B, code_size), dtype=jnp.float32)
    t = jax.random.normal(kt, (B, num_topics), dtype=jnp.float32)

    # nn.Linear weight [2H, C+T] in torch -> stored transposed as [C+T, 2H].
    fan_in = code_size + num_topics
    bound = 1.0 / jnp.sqrt(fan_in)
    weight = jax.random.uniform(kw, (fan_in, 2 * hidden_size),
                                minval=-bound, maxval=bound, dtype=jnp.float32)
    bias = jax.random.uniform(kb, (2 * hidden_size,),
                              minval=-bound, maxval=bound, dtype=jnp.float32)

    # Force the Pallas path (the default heuristic would route B=8 to the XLA
    # fallback) so the kernel is actually compiled and run here.
    h, c = concat_fuser(z, t, weight, bias, min_pallas_batch=0)
    jax.block_until_ready((h, c))

    # Reference check in plain JAX.
    ref = jnp.tanh(jnp.concatenate([z, t], axis=1) @ weight + bias)[None]
    ref_h, ref_c = jnp.split(ref, 2, axis=2)
    assert h.shape == (1, B, hidden_size) and c.shape == (1, B, hidden_size)
    assert jnp.allclose(h, ref_h, atol=1e-5) and jnp.allclose(c, ref_c, atol=1e-5)

    # The default (small-batch fallback) path must agree too.
    h2, c2 = concat_fuser(z, t, weight, bias)
    assert jnp.allclose(h2, ref_h, atol=1e-5) and jnp.allclose(c2, ref_c, atol=1e-5)

    print("KERNEL_OK")
</pallas_src>

<mosaic_0001>
module attributes {stable_mosaic.version = 11 : i64} {
  func.func @_concat_fuser_kernel(%arg0: i32, %arg1: memref<8x16xf32, #tpu.memory_space<vmem>>, %arg2: memref<8x16xf32, #tpu.memory_space<vmem>>, %arg3: memref<16x64xf32, #tpu.memory_space<vmem>>, %arg4: memref<16x64xf32, #tpu.memory_space<vmem>>, %arg5: memref<1x64xf32, #tpu.memory_space<vmem>>, %arg6: memref<8x64xf32, #tpu.memory_space<vmem>>) attributes {dimension_semantics = [#tpu.dimension_semantics<parallel>], iteration_bounds = array<i64: 1>, scalar_prefetch = 0 : i64, scratch_operands = 0 : i64, tpu.core_type = #tpu.core_type<tc>, window_params = [{transform_indices = @transform_0, window_bounds = array<i64: 8, 16>}, {transform_indices = @transform_1, window_bounds = array<i64: 8, 16>}, {pipeline_mode = #tpu.pipeline_mode<synchronous>, transform_indices = @transform_2, window_bounds = array<i64: 16, 64>}, {pipeline_mode = #tpu.pipeline_mode<synchronous>, transform_indices = @transform_3, window_bounds = array<i64: 16, 64>}, {pipeline_mode = #tpu.pipeline_mode<synchronous>, transform_indices = @transform_4, window_bounds = array<i64: 1, 64>}, {transform_indices = @transform_5, window_bounds = array<i64: 8, 64>}]} {
    %c0 = arith.constant 0 : index
    %c0_0 = arith.constant 0 : index
    %0 = vector.load %arg1[%c0, %c0_0] : memref<8x16xf32, #tpu.memory_space<vmem>>, vector<8x16xf32>
    %c0_1 = arith.constant 0 : index
    %c0_2 = arith.constant 0 : index
    %1 = vector.load %arg3[%c0_1, %c0_2] : memref<16x64xf32, #tpu.memory_space<vmem>>, vector<16x64xf32>
    %cst = arith.constant dense<0.000000e+00> : vector<8x64xf32>
    %2 = tpu.matmul %0, %1, %cst {dimension_numbers = #tpu.dot_dimension_numbers<[1], [0], [0], [1], [0, 0, 1, 1], [], []>} : vector<8x16xf32>, vector<16x64xf32>, vector<8x64xf32> -> vector<8x64xf32>
    %c0_3 = arith.constant 0 : index
    %c0_4 = arith.constant 0 : index
    %3 = vector.load %arg2[%c0_3, %c0_4] : memref<8x16xf32, #tpu.memory_space<vmem>>, vector<8x16xf32>
    %c0_5 = arith.constant 0 : index
    %c0_6 = arith.constant 0 : index
    %4 = vector.load %arg4[%c0_5, %c0_6] : memref<16x64xf32, #tpu.memory_space<vmem>>, vector<16x64xf32>
    %cst_7 = arith.constant dense<0.000000e+00> : vector<8x64xf32>
    %5 = tpu.matmul %3, %4, %cst_7 {dimension_numbers = #tpu.dot_dimension_numbers<[1], [0], [0], [1], [0, 0, 1, 1], [], []>} : vector<8x16xf32>, vector<16x64xf32>, vector<8x64xf32> -> vector<8x64xf32>
    %6 = arith.addf %2, %5 : vector<8x64xf32>
    %c0_8 = arith.constant 0 : index
    %c0_9 = arith.constant 0 : index
    %7 = vector.load %arg5[%c0_8, %c0_9] : memref<1x64xf32, #tpu.memory_space<vmem>>, vector<1x64xf32>
    %8 = vector.broadcast %7 : vector<1x64xf32> to vector<8x64xf32>
    %9 = arith.addf %6, %8 : vector<8x64xf32>
    %10 = math.tanh %9 : vector<8x64xf32>
    %c0_10 = arith.constant 0 : index
    %c0_11 = arith.constant 0 : index
    %11 = vector.load %arg6[%c0_10, %c0_11] : memref<8x64xf32, #tpu.memory_space<vmem>>, vector<8x64xf32>
    tpu.vector_store %arg6[%c0_10, %c0_11], %10 {strides = array<i32>} : memref<8x64xf32, #tpu.memory_space<vmem>>, vector<8x64xf32>,
    return
  }
  func.func @transform_0(%arg0: i32) -> (i32, i32) {
    %c0_i32 = arith.constant 0 : i32
    %c0_i32_0 = arith.constant 0 : i32
    return %arg0, %c0_i32 : i32, i32
  }
  func.func @transform_1(%arg0: i32) -> (i32, i32) {
    %c0_i32 = arith.constant 0 : i32
    %c0_i32_0 = arith.constant 0 : i32
    return %arg0, %c0_i32 : i32, i32
  }
  func.func @transform_2(%arg0: i32) -> (i32, i32) {
    %c0_i32 = arith.constant 0 : i32
    %c0_i32_0 = arith.constant 0 : i32
    %c0_i32_1 = arith.constant 0 : i32
    return %c0_i32, %c0_i32_0 : i32, i32
  }
  func.func @transform_3(%arg0: i32) -> (i32, i32) {
    %c0_i32 = arith.constant 0 : i32
    %c0_i32_0 = arith.constant 0 : i32
    %c0_i32_1 = arith.constant 0 : i32
    return %c0_i32, %c0_i32_0 : i32, i32
  }
  func.func @transform_4(%arg0: i32) -> (i32, i32) {
    %c0_i32 = arith.constant 0 : i32
    %c0_i32_0 = arith.constant 0 : i32
    %c0_i32_1 = arith.constant 0 : i32
    return %c0_i32, %c0_i32_0 : i32, i32
  }
  func.func @transform_5(%arg0: i32) -> (i32, i32) {
    %c0_i32 = arith.constant 0 : i32
    %c0_i32_0 = arith.constant 0 : i32
    return %arg0, %c0_i32 : i32, i32
  }
}

</mosaic_0001>

<bundles_post_ra>
// kernel: tpu_custom_call.1
= control target key start
LH: loop header
LB: loop body
LE: loop exit
PB: predicated region body
PF: predicated region fallthrough
CT: control target
= control target key end

     0   :  { %10 = vsyncpa [#allocation3], 0  ;;  %s452_s0 = inlined_call_operand.hbm [shape: f32[8,16], index: 0, kind: input, shape index: {}]   ;;  %s453_s1 = inlined_call_operand.hbm [shape: f32[8,16], index: 1, kind: input, shape index: {}]   ;;  %s454_s2 = inlined_call_operand.hbm [shape: f32[16,64], index: 2, kind: input, shape index: {}]   ;;  %s455_s3 = inlined_call_operand.hbm [shape: f32[16,64], index: 3, kind: input, shape index: {}]   ;;  %s456_s4 = inlined_call_operand.vmem [shape: f32[1,64], index: 4, kind: input, shape index: {}]   ;;  %s457_s5 = inlined_call_operand.hbm [shape: f32[8,64], index: 5, kind: output, shape index: {}]  }
   0x1   :  { %11 = vsyncpa [#allocation6], 0 }
   0x2   :  { %12 = vsyncpa [#allocation9], 0 }
   0x3   :  { %13 = vsyncpa [#allocation4], 0  ;;  %s395_s18 = smov [#allocation5]   ;;  %s396_s20 = smov [#allocation2]  }
   0x4   :  { %s30_s19 = sshll.u32 %s395_s18, 4  ;;  %s20_s21 = sshll.u32 %s396_s20, 4  ;;  %s31_s19 = int_to_ptr.vmem [resolvable:$true] %s30_s19  ;;  %s21_s21 = int_to_ptr.vmem [resolvable:$true] %s20_s21 }
   0x5   :  { %s295_s22 = scalar_lea.vmem %s31_s19, 128  ;;  %p300_p1 = scmp.lt.s32.totalorder %s31_s19, %s31_s19 }
   0x6   :  { %p296_p0 = scmp.ne.s32.totalorder %s31_s19, %s295_s22  ;;  %p301_p2 = scmp.lt.s32.totalorder %s295_s22, %s295_s22 }
   0x8   :  { %p302_p3 = por %p301_p2, %p300_p1 }
   0xa   :  { %p303_p4 = pnand %p302_p3, %p296_p0 }
   0xc   :  { %306 = shalt.err (!%p303_p4)
}
   0xd   :  { %33 = dma.hbm_to_vmem [thread:$0]  %s453_s1, 128, %s31_s19, [#allocation6]  }
   0xe   :  { %s315_s25 = scalar_lea.vmem %s21_s21, 128  ;;  %p320_p6 = scmp.lt.s32.totalorder %s21_s21, %s21_s21 }
   0xf   :  { %p316_p5 = scmp.ne.s32.totalorder %s21_s21, %s315_s25  ;;  %p321_p7 = scmp.lt.s32.totalorder %s315_s25, %s315_s25 }
  0x11   :  { %p322_p8 = por %p321_p7, %p320_p6 }
  0x13   :  { %p323_p9 = pnand %p322_p8, %p316_p5 }
  0x15   :  { %326 = shalt.err (!%p323_p9)
}
  0x16   :  { %23 = dma.hbm_to_vmem [thread:$0]  %s452_s0, 128, %s21_s21, [#allocation3]  }
  0x17   :  { %s397_s28 = smov [#allocation7]  }
  0x18   :  { %s39_s29 = sshll.u32 %s397_s28, 4  ;;  %s40_s29 = int_to_ptr.vmem [resolvable:$true] %s39_s29 }
  0x19   :  { %s335_s30 = scalar_lea.vmem %s40_s29, 256  ;;  %p340_p11 = scmp.lt.s32.totalorder %s40_s29, %s40_s29 }
  0x1a   :  { %p336_p10 = scmp.ne.s32.totalorder %s40_s29, %s335_s30  ;;  %p341_p12 = scmp.lt.s32.totalorder %s335_s30, %s335_s30 }
  0x1c   :  { %p342_p13 = por %p341_p12, %p340_p11 }
  0x1e   :  { %p343_p0 = pnand %p342_p13, %p336_p10 }
  0x20   :  { %346 = shalt.err (!%p343_p0)
}
  0x21   :  { %s398_s1 = smov 128   ;;  %s399_s6 = smov 8  }
  0x22   :  { %45 = dma.hbm_to_vmem [thread:$0]  %s454_s2, 256, %s40_s29, [#allocation6], %s398_s1, %s398_s1, %s399_s6  }
  0x23   :  { %s400_s9 = smov [#allocation8]  }
  0x24   :  { %s51_s10 = sshll.u32 %s400_s9, 4  ;;  %s52_s10 = int_to_ptr.vmem [resolvable:$true] %s51_s10 }
  0x25   :  { %s355_s0 = scalar_lea.vmem %s52_s10, 256  ;;  %p360_p2 = scmp.lt.s32.totalorder %s52_s10, %s52_s10 }
  0x26   :  { %p356_p1 = scmp.ne.s32.totalorder %s52_s10, %s355_s0  ;;  %p361_p3 = scmp.lt.s32.totalorder %s355_s0, %s355_s0 }
  0x28   :  { %p362_p4 = por %p361_p3, %p360_p2 }
  0x2a   :  { %p363_p5 = pnand %p362_p4, %p356_p1 }
  0x2c   :  { %366 = shalt.err (!%p363_p5)
}
  0x2d   :  { %57 = dma.hbm_to_vmem [thread:$0]  %s455_s3, 256, %s52_s10, [#allocation9], %s398_s1, %s398_s1, %s399_s6  }
  0x2e   :  { %387 = dma.done.wait [#allocation3], 128  }
  0x2f   :  { %388 = vsyncadd [#allocation3], 4294967168 }
  0x30   :  { %389 = dma.done.wait [#allocation6], 384  }
  0x31   :  { %390 = vsyncadd [#allocation6], 4294966912 }
  0x32   :  { %391 = dma.done.wait [#allocation9], 256  }
  0x33   :  { %392 = vsyncadd [#allocation9], 4294967040  ;;  %v401_v0 = vmov 0.0   ;;  %vm402_vm0 = vmmov 0   ;;  %v77_v1 = vld [vmem:[#allocation8 + $0x8] sm:$0xff]  ;;  %v74_v2 = vld [vmem:[#allocation7 + $0x8] sm:$0xff] }
  0x34   :  { %262 = vmatprep.subr.mxu0 %v401_v0  ;;  %269 = vmatprep.subr.mxu1 %v401_v0  ;;  %v76_v3 = vld [vmem:[#allocation8] sm:$0xff]  ;;  %v73_v4 = vld [vmem:[#allocation7] sm:$0xff]  ;;  %v75_v5 = vld [vmem:[#allocation5] sm:$0xff]  ;;  %vm78_vm1 = vcmask 130048   ;;  %s403_s13 = smov [#allocation10]   ;;  %vm234_vm2 = vcmask 523264  }
  0x35   :  { %266 = vmatprep.mubr.msk.f32.mxu0 %vm402_vm0, %v401_v0  ;;  %273 = vmatprep.mubr.msk.f32.mxu1 %vm402_vm0, %v401_v0  ;;  %v72_v6 = vld [vmem:[#allocation2] sm:$0xff]  ;;  %s242_s14 = sshll.u32 %s403_s13, 4  ;;  %s243_s14 = int_to_ptr.vmem [resolvable:$true] %s242_s14 }
  0x36   :  { %263 = vmatpush3.msra.mxu0 %v77_v1  ;;  %270 = vmatpush3.msra.mxu1 %v74_v2  ;;  %v255_v9 = vld [vmem:[%s456_s4] ss:$0 sm:$0xff]  ;;  %s367_s15 = scalar_lea.vmem %s243_s14, 128  ;;  %p372_p7 = scmp.lt.s32.totalorder %s243_s14, %s243_s14 }
  0x37   :  { %264 = vmatprep.subr.mxu0 %v401_v0  ;;  %271 = vmatprep.subr.mxu1 %v401_v0  ;;  %p368_p6 = scmp.ne.s32.totalorder %s243_s14, %s367_s15  ;;  %p373_p8 = scmp.lt.s32.totalorder %s367_s15, %s367_s15 }
  0x38   :  { %265 = vmatpush3.msra.mxu0 %v76_v3  ;;  %272 = vmatpush3.msra.mxu1 %v73_v4 }
  0x39   :  { %267 = vmatmul.mubr.msk.f32.vlgmr.msra.gmra.mxu0 %vm78_vm1, %v75_v5  ;;  %274 = vmatmul.mubr.msk.f32.vlgmr.msra.gmra.mxu1 %vm78_vm1, %v72_v6  ;;  %p374_p9 = por %p373_p8, %p372_p7 }
  0x3b   :  { %p375_p10 = pnand %p374_p9, %p368_p6 }
  0xf9   :  { %v148_v7 = vpop.f32.mrf.mxu0  ;;  %v221_v8 = vpop.f32.mrf.mxu1 }
  0xfa   :  { %v222_v10 = vadd.f32 %v221_v8, %v148_v7 }
  0xfb   :  { %v268_v11 = vpop.f32.mrf.mxu0  ;;  %v275_v12 = vpop.f32.mrf.mxu1 }
  0xfc   :  { %v232_v13 = vadd.f32 %v255_v9, %v222_v10 }
  0xfe   :  { %285 = vtanh.f32 %v232_v13 }
 0x10b   :  { %v286_v14 = vpop.eup %285 }
 0x10c   :  { %235 = vst.msk [vmem:[#allocation10] sm:$0xff] %vm234_vm2, %v286_v14 }
 0x10d   :  { %378 = shalt.err (!%p375_p10)
}
 0x10e   :  { %245 = dma.vmem_to_hbm [thread:$0]  %s243_s14, 128, %s457_s5, [#allocation4]  }
 0x10f   :  { %393 = dma.done.wait [#allocation4], 128  }
 0x110   :  { %394 = vsyncadd [#allocation4], 4294967168 }
 0x111   :  { %249 = vsyncpa [#allocation3], 1 }
 0x112   :  { %250 = vsyncpa [#allocation6], 1 }
 0x113   :  { %251 = vsyncpa [#allocation9], 1 }
 0x114   :  { %252 = vsyncpa [#allocation4], 1 }

</bundles_post_ra>
